<compile_context>
chip_gen: v5e
topology: v5e:2x2
jax: 0.10.0
libtpu: 0.0.40
codegen_flags: <defaults>
</compile_context>

<pallas_src>
import math

import jax
import jax.numpy as jnp
from jax.experimental import pallas as pl
from jax.experimental.pallas import tpu as pltpu


def _round_up(x, m):
    return ((x + m - 1) // m) * m


def _radar_pe_kernel(vals_ref, w_ref, out_ref):
    # vals_ref : (tile_p, K)         f32  packed per-row scalars + constant-1 bias col
    # w_ref    : (K, lane_out)       f32  resident fused expansion weights (+ bias row)
    # out_ref  : (tile_p, lane_out)  packed, lane-dense output block
    out_ref[...] = jnp.dot(
        vals_ref[...], w_ref[...],
        preferred_element_type=jnp.float32,
        precision=jax.lax.Precision.HIGHEST,   # full f32 accuracy on the MXU
    ).astype(out_ref.dtype)


def radar_positional_encoding(detections, weights, biases, *, out_dtype=jnp.float32):
    """detections: (B, S, F) array.
    weights: list of 4 arrays each (d4, 1)  (range, azimuth, doppler, time)
    biases : list of 4 arrays each (d4,)
    returns (B, S, 4*d4) in out_dtype (default f32, matching the PyTorch module).
    """
    B, S, F = detections.shape
    d4 = weights[0].shape[0]
    d_model = 4 * d4
    N = B * S

    # Packing factor so the kernel output lane width is a multiple of 128.
    G = 128 // math.gcd(d_model, 128)
    lane_out = G * d_model

    # --- cheap wrapper-side prep on the tiny F-wide input --------------------
    det = detections.astype(jnp.float32).reshape(N, F)          # single cast
    rng_v = det[:, 0]
    az_v = det[:, 1]
    dop_v = det[:, 2] if F > 2 else jnp.zeros_like(rng_v)
    t_v = (jnp.arange(N) % S).astype(jnp.float32)               # time = position in seq
    vals = jnp.stack([rng_v, az_v, dop_v, t_v], axis=-1)        # (N, 4)

    # --- tiling: packed rows, biggest block that comfortably fits VMEM -------
    np_rows = pl.cdiv(N, G)
    tile_p = min(1024, _round_up(np_rows, 8))    # multiple of 8; <=0.5 MiB out block
    n_tiles = pl.cdiv(np_rows, tile_p)
    # v7x has 2 TensorCores: prefer an even grid-step count when it is free.
    if n_tiles > 1 and n_tiles % 2 == 1:
        alt = _round_up(pl.cdiv(np_rows, n_tiles + 1), 8)
        if alt >= 8 and pl.cdiv(np_rows, alt) % 2 == 0:
            tile_p, n_tiles = alt, pl.cdiv(np_rows, alt)
    np_pad = n_tiles * tile_p
    total_rows = np_pad * G

    # --- fused expansion matrix: out = [vals | 1] @ W_exp (bias folded in) ---
    K = _round_up(4 * G + 1, 8)
    w_exp = jnp.zeros((K, lane_out), dtype=jnp.float32)
    for g in range(G):
        for k in range(4):
            col0 = g * d_model + k * d4
            w_exp = w_exp.at[g * 4 + k, col0:col0 + d4].set(
                weights[k][:, 0].astype(jnp.float32))
    b_cat = jnp.concatenate([b.astype(jnp.float32) for b in biases])   # (d_model,)
    w_exp = w_exp.at[4 * G, :].set(jnp.tile(b_cat, G))                 # bias row

    # Packed (contiguous, row-major) value matrix with the constant-1 bias column.
    vals = jnp.pad(vals, ((0, total_rows - N), (0, 0)))
    vals_packed = vals.reshape(np_pad, 4 * G)
    cols = [vals_packed, jnp.ones((np_pad, 1), jnp.float32)]
    if K > 4 * G + 1:
        cols.append(jnp.zeros((np_pad, K - 4 * G - 1), jnp.float32))
    vals_aug = jnp.concatenate(cols, axis=-1)                          # (np_pad, K)

    out_packed = pl.pallas_call(
        _radar_pe_kernel,
        out_shape=jax.ShapeDtypeStruct((np_pad, lane_out), out_dtype),
        grid_spec=pltpu.PrefetchScalarGridSpec(
            num_scalar_prefetch=0,
            grid=(n_tiles,),
            in_specs=[
                pl.BlockSpec((tile_p, K), lambda i: (i, 0)),
                pl.BlockSpec((K, lane_out), lambda i: (0, 0)),    # resident W_exp
            ],
            out_specs=pl.BlockSpec((tile_p, lane_out), lambda i: (i, 0)),
        ),
        compiler_params=pltpu.CompilerParams(
            dimension_semantics=("parallel",),
        ),
    )(vals_aug, w_exp)

    # Contiguous (free) un-packing back to the natural layout, drop padding.
    # TODO(synk): confirm this slice fuses into the consumer (or let the consumer
    # accept the packed (np_pad, lane_out) layout / bf16 out_dtype) so the epilogue
    # never materializes an extra HBM copy.
    out = out_packed.reshape(total_rows, d_model)[:N].reshape(B, S, d_model)
    return out


def _reference(detections, weights, biases):
    """Pure-JAX reference mirroring the PyTorch forward."""
    B, S, F = detections.shape
    rng_v = detections[:, :, 0:1]
    az_v = detections[:, :, 1:2]
    dop_v = detections[:, :, 2:3] if F > 2 else jnp.zeros_like(rng_v)
    t_v = jnp.broadcast_to(jnp.arange(S, dtype=jnp.float32)[None, :, None], (B, S, 1))
    vals = [rng_v, az_v, dop_v, t_v]
    embs = [v @ weights[k].T + biases[k] for k, v in enumerate(vals)]
    return jnp.concatenate(embs, axis=-1)


if __name__ == "__main__":
    key = jax.random.PRNGKey(0)
    B, S, F = 2, 8, 5
    d_model = 32
    d4 = d_model // 4

    k_det, *k_params = jax.random.split(key, 9)
    detections = jax.random.normal(k_det, (B, S, F), dtype=jnp.float32)

    # Parameter shapes match nn.Linear(1, d_model//4): weight (d4, 1), bias (d4,)
    weights = [jax.random.uniform(k_params[2 * i], (d4, 1), jnp.float32, -1.0, 1.0)
               for i in range(4)]
    biases = [jax.random.uniform(k_params[2 * i + 1], (d4,), jnp.float32, -1.0, 1.0)
              for i in range(4)]

    out = radar_positional_encoding(detections, weights, biases)
    out = jax.block_until_ready(out)

    ref = _reference(detections, weights, biases)
    assert out.shape == (B, S, d_model), out.shape
    assert jnp.allclose(out, ref, atol=1e-5, rtol=1e-5), "mismatch vs reference"

    print("KERNEL_OK")
</pallas_src>

<mosaic_0001>
module attributes {stable_mosaic.version = 11 : i64} {
  func.func @_radar_pe_kernel(%arg0: i32, %arg1: memref<8x24xf32, #tpu.memory_space<vmem>>, %arg2: memref<24x128xf32, #tpu.memory_space<vmem>>, %arg3: memref<8x128xf32, #tpu.memory_space<vmem>>) attributes {dimension_semantics = [#tpu.dimension_semantics<parallel>], iteration_bounds = array<i64: 1>, scalar_prefetch = 0 : i64, scratch_operands = 0 : i64, tpu.core_type = #tpu.core_type<tc>, window_params = [{transform_indices = @transform_0, window_bounds = array<i64: 8, 24>}, {pipeline_mode = #tpu.pipeline_mode<synchronous>, transform_indices = @transform_1, window_bounds = array<i64: 24, 128>}, {transform_indices = @transform_2, window_bounds = array<i64: 8, 128>}]} {
    %c0 = arith.constant 0 : index
    %c0_0 = arith.constant 0 : index
    %0 = vector.load %arg1[%c0, %c0_0] : memref<8x24xf32, #tpu.memory_space<vmem>>, vector<8x24xf32>
    %c0_1 = arith.constant 0 : index
    %c0_2 = arith.constant 0 : index
    %1 = vector.load %arg2[%c0_1, %c0_2] : memref<24x128xf32, #tpu.memory_space<vmem>>, vector<24x128xf32>
    %cst = arith.constant dense<0.000000e+00> : vector<8x128xf32>
    %2 = tpu.matmul %0, %1, %cst {dimension_numbers = #tpu.dot_dimension_numbers<[1], [0], [0], [1], [0, 0, 1, 1], [], []>, precision = #tpu.contract_precision<fp32>} : vector<8x24xf32>, vector<24x128xf32>, vector<8x128xf32> -> vector<8x128xf32>
    %c0_3 = arith.constant 0 : index
    %c0_4 = arith.constant 0 : index
    %3 = vector.load %arg3[%c0_3, %c0_4] : memref<8x128xf32, #tpu.memory_space<vmem>>, vector<8x128xf32>
    tpu.vector_store %arg3[%c0_3, %c0_4], %2 {strides = array<i32>} : memref<8x128xf32, #tpu.memory_space<vmem>>, vector<8x128xf32>,
    return
  }
  func.func @transform_0(%arg0: i32) -> (i32, i32) {
    %c0_i32 = arith.constant 0 : i32
    %c0_i32_0 = arith.constant 0 : i32
    return %arg0, %c0_i32 : i32, i32
  }
  func.func @transform_1(%arg0: i32) -> (i32, i32) {
    %c0_i32 = arith.constant 0 : i32
    %c0_i32_0 = arith.constant 0 : i32
    %c0_i32_1 = arith.constant 0 : i32
    return %c0_i32, %c0_i32_0 : i32, i32
  }
  func.func @transform_2(%arg0: i32) -> (i32, i32) {
    %c0_i32 = arith.constant 0 : i32
    %c0_i32_0 = arith.constant 0 : i32
    return %arg0, %c0_i32 : i32, i32
  }
}

</mosaic_0001>

<bundles_post_ra>
// kernel: tpu_custom_call.1
= control target key start
LH: loop header
LB: loop body
LE: loop exit
PB: predicated region body
PF: predicated region fallthrough
CT: control target
= control target key end

     0   :  { %7 = vsyncpa [#allocation3], 0  ;;  %s353_s0 = inlined_call_operand.hbm [shape: f32[8,24], index: 0, kind: input, shape index: {}]   ;;  %s354_s1 = inlined_call_operand.hbm [shape: f32[24,128], index: 1, kind: input, shape index: {}]   ;;  %s355_s2 = inlined_call_operand.hbm [shape: f32[8,128], index: 2, kind: output, shape index: {}]  }
   0x1   :  { %8 = vsyncpa [#allocation6], 0 }
   0x2   :  { %9 = vsyncpa [#allocation4], 0  ;;  %s15_s11 = sshll.u32 %s353_s0, 4  ;;  %s324_s12 = smov [#allocation2]   ;;  %s16_s11 = int_to_ptr.hbm [resolvable:$true] %s15_s11 }
   0x3   :  { %s17_s13 = sshll.u32 %s324_s12, 4  ;;  %s25_s16 = sshll.u32 %s354_s1, 4  ;;  %s18_s13 = int_to_ptr.vmem [resolvable:$true] %s17_s13  ;;  %s26_s16 = int_to_ptr.hbm [resolvable:$true] %s25_s16 }
   0x4   :  { %20 = dma.hbm_to_vmem [thread:$0]  %s16_s11, 128, %s18_s13, [#allocation3]  }
   0x5   :  { %s325_s17 = smov [#allocation5]   ;;  %s326_s19 = smov 128  }
   0x6   :  { %s27_s18 = sshll.u32 %s325_s17, 4  ;;  %s327_s20 = smov 8   ;;  %s28_s18 = int_to_ptr.vmem [resolvable:$true] %s27_s18 }
   0x7   :  { %33 = dma.hbm_to_vmem [thread:$0]  %s26_s16, 384, %s28_s18, [#allocation6], %s326_s19, %s326_s19, %s327_s20  }
   0x8   :  { %318 = dma.done.wait [#allocation3], 128  }
   0x9   :  { %319 = vsyncadd [#allocation3], 4294967168 }
   0xa   :  { %320 = dma.done.wait [#allocation6], 384  }
   0xb   :  { %321 = vsyncadd [#allocation6], 4294966912  ;;  %vm46_vm0 = vcmask 195584   ;;  %v45_v0 = vld [vmem:[#allocation5 + $0x10] sm:$0xff]  ;;  %v44_v1 = vld [vmem:[#allocation5 + $0x8] sm:$0xff]  ;;  %s328_s0 = smov [#allocation7]  }
   0xc   :  { %v43_v2 = vld [vmem:[#allocation5] sm:$0xff]  ;;  %v63_v3 = vand.u32 4294901760, %v45_v0  ;;  %v65_v4 = vand.u32 4294901760, %v44_v1  ;;  %v42_v6 = vld [vmem:[#allocation2] sm:$0xff]  ;;  %s228_s1 = sshll.u32 %s328_s0, 4  ;;  %s230_s23 = sshll.u32 %s355_s2, 4  ;;  %s229_s1 = int_to_ptr.vmem [resolvable:$true] %s228_s1  ;;  %s231_s23 = int_to_ptr.hbm [resolvable:$true] %s230_s23 }
   0xd   :  { %v67_v5 = vand.u32 4294901760, %v43_v2  ;;  %v48_v7 = vsel %vm46_vm0, %v42_v6, 0 }
   0xe   :  { %v92_v8 = vsub.f32 %v45_v0, %v63_v3  ;;  %64 = vmatpush.msra.mxu0 %v63_v3  ;;  %v98_v9 = vsub.f32 %v44_v1, %v65_v4  ;;  %156 = vmatpush.msra.mxu3 %v63_v3  ;;  %v69_v11 = vand.u32 4294901760, %v48_v7 }
   0xf   :  { %v104_v10 = vsub.f32 %v43_v2, %v67_v5 }
  0x10   :  { %129 = vmatpush.msra.mxu2 %v92_v8  ;;  %66 = vmatpush.msra.mxu0 %v65_v4  ;;  %v93_v12 = vand.u32 4294901760, %v92_v8  ;;  %v70_v13 = vsub.f32 %v48_v7, %v69_v11  ;;  %v99_v14 = vand.u32 4294901760, %v98_v9 }
  0x11   :  { %v105_v15 = vand.u32 4294901760, %v104_v10  ;;  %158 = vmatpush.msra.mxu3 %v65_v4 }
  0x12   :  { %132 = vmatpush.msra.mxu2 %v98_v9  ;;  %v94_v16 = vsub.f32 %v92_v8, %v93_v12  ;;  %68 = vmatpush.msra.mxu0 %v67_v5  ;;  %v100_v17 = vsub.f32 %v98_v9, %v99_v14  ;;  %v71_v18 = vand.u32 4294901760, %v70_v13 }
  0x13   :  { %v106_v19 = vsub.f32 %v104_v10, %v105_v15  ;;  %160 = vmatpush.msra.mxu3 %v67_v5 }
  0x14   :  { %184 = vmatpush.msrb.mxu0 %v93_v12  ;;  %v95_v20 = vand.u32 4294901760, %v94_v16  ;;  %135 = vmatpush.msra.mxu2 %v104_v10  ;;  %v101_v21 = vand.u32 4294901760, %v100_v17  ;;  %v72_v22 = vsub.f32 %v70_v13, %v71_v18 }
  0x15   :  { %164 = vmatmul.f32.vlgmr.msra.gmra.mxu3 %v71_v18  ;;  %138 = vmatmul.f32.vlgmr.msra.gmra.mxu2 %v70_v13  ;;  %v107_v24 = vand.u32 4294901760, %v106_v19 }
  0x16   :  { %188 = vmatpush.msrb.mxu0 %v99_v14  ;;  %96 = vmatpush.msra.mxu1 %v95_v20  ;;  %v73_v23 = vand.u32 4294901760, %v72_v22 }
  0x18   :  { %192 = vmatpush.msrb.mxu0 %v105_v15  ;;  %102 = vmatpush.msra.mxu1 %v101_v21 }
  0x19   :  { %74 = vmatmul.f32.vlgmr.msra.gmra.mxu0 %v73_v23 }
  0x1a   :  { %108 = vmatpush.msra.mxu1 %v107_v24 }
  0x1b   :  { %110 = vmatmul.f32.vlgmr.msra.gmra.mxu1 %v69_v11 }
  0x1c   :  { %212 = vmatpush.msrb.mxu1 %v63_v3 }
  0x1e   :  { %214 = vmatpush.msrb.mxu1 %v65_v4 }
  0x20   :  { %216 = vmatpush.msrb.mxu1 %v67_v5 }
  0x21   :  { %194 = vmatmul.f32.vlgmr.msrb.gmra.mxu0 %v69_v11 }
  0x23   :  { %218 = vmatmul.f32.vlgmr.msrb.gmra.mxu1 %v69_v11 }
  0x96   :  { %v75_v25 = vpop.f32.mrf.mxu0 }
  0x98   :  { %v111_v26 = vpop.f32.mrf.mxu1  ;;  %v139_v27 = vpop.f32.mrf.mxu2 }
  0x99   :  { %v112_v28 = vadd.f32 %v111_v26, %v75_v25  ;;  %v165_v29 = vpop.f32.mrf.mxu3 }
  0x9b   :  { %v140_v30 = vadd.f32 %v139_v27, %v112_v28 }
  0x9d   :  { %v166_v31 = vadd.f32 %v165_v29, %v140_v30 }
  0x9e   :  { %v195_v32 = vpop.f32.mrf.mxu0 }
  0x9f   :  { %v196_v33 = vadd.f32 %v195_v32, %v166_v31 }
  0xa0   :  { %v219_v34 = vpop.f32.mrf.mxu1 }
  0xa1   :  { %v220_v35 = vadd.f32 %v219_v34, %v196_v33 }
  0xa3   :  { %222 = vst [vmem:[#allocation7] sm:$0xff] %v220_v35 }
  0xa4   :  { %233 = dma.vmem_to_hbm [thread:$0]  %s229_s1, 128, %s231_s23, [#allocation4]  }
  0xa5   :  { %322 = dma.done.wait [#allocation4], 128  }
  0xa6   :  { %323 = vsyncadd [#allocation4], 4294967168 }
  0xa7   :  { %238 = vsyncpa [#allocation3], 1 }
  0xa8   :  { %239 = vsyncpa [#allocation6], 1 }
  0xa9   :  { %240 = vsyncpa [#allocation4], 1 }

</bundles_post_ra>
